<compile_context>
chip_gen: v5e
topology: v5e:2x2
jax: 0.10.0
libtpu: 0.0.40
codegen_flags: <defaults>
</compile_context>

<pallas_src>
import numpy as np
import jax
import jax.numpy as jnp
from jax.experimental import pallas as pl
from jax.experimental.pallas import tpu as pltpu


def _bilinear_matrix(in_size: int, out_size: int) -> np.ndarray:
    """Row-interpolation matrix reproducing PyTorch bilinear upsample (align_corners=False)."""
    scale = in_size / out_size                    # == 1 / scale_factor
    m = np.zeros((out_size, in_size), np.float32)
    for o in range(out_size):
        src = scale * (o + 0.5) - 0.5
        src = max(src, 0.0)                       # PyTorch clamps negative source coords to 0
        i0 = min(int(np.floor(src)), in_size - 1)
        i1 = min(i0 + 1, in_size - 1)             # edge-clamped neighbor
        w1 = src - i0
        m[o, i0] += 1.0 - w1
        m[o, i1] += w1
    return m


def _largest_divisor_leq(x: int, cap: int) -> int:
    cap = max(1, min(x, cap))
    for d in range(cap, 0, -1):
        if x % d == 0:
            return d
    return 1


def _pick_block_sizes(n, c, h, w, in_bytes, out_bytes):
    """Pick (Nb, Ct) so double-buffered blocks fit the default scoped VMEM on all gens."""
    ho, wo = 4 * h, 4 * w
    out_budget = 3 << 20          # per-buffer output-block budget (bytes)
    in_budget = 3 << 20           # per-buffer input-block budget (bytes)
    # Batch block bounded by the (dominant, 16x larger) output block.
    nb_cap = max(1, out_budget // max(1, ho * wo * out_bytes))
    if n >= 2:
        nb_cap = min(nb_cap, (n + 1) // 2)   # >=2 batch grid steps -> both v7x TCs get work
    nb = _largest_divisor_leq(n, nb_cap)
    # Channel chunk bounded by the input block for the chosen Nb.
    ct_cap = max(1, in_budget // max(1, nb * h * w * in_bytes))
    ct = _largest_divisor_leq(c, ct_cap)
    return nb, ct


def _channel_attention_kernel(x_ref, uh_ref, uwt_ref, o_ref, acc_ref):
    # x_ref  : [Nb, Ct, H, W]  one (batch-block, channel-chunk) tile, native dtype
    # uh_ref : [Ho, H]         row-interpolation matrix
    # uwt_ref: [W, Wo]         column-interpolation matrix (transposed)
    # o_ref  : [Nb, Ho, Wo]
    # acc_ref: VMEM f32 [Nb, H, W] channel-sum accumulator (persists across the channel axis)
    k = pl.program_id(1)

    @pl.when(k == 0)
    def _init():
        acc_ref[...] = jnp.zeros_like(acc_ref)

    x = x_ref[...].astype(jnp.float32)              # upcast in-vreg (accepts bf16 inputs)
    acc_ref[...] += jnp.sum(jnp.abs(x), axis=1)     # partial channel reduce -> [Nb, H, W]

    @pl.when(k == pl.num_programs(1) - 1)
    def _finalize():
        nb, h, w = acc_ref.shape
        ho = uh_ref.shape[0]
        wo = uwt_ref.shape[1]
        s = acc_ref[...]
        # sigmoid: exp lands on the EUP; exact reciprocal keeps 1e-5 parity with the reference
        # (pl.reciprocal(..., approx=True) would move the divide to the EUP too, at ~1e-3).
        mask = pl.reciprocal(1.0 + jnp.exp(-s), approx=False)            # [Nb, H, W]

        # 4x bilinear upsample as two MXU matmuls.
        # First contraction fused across the whole batch block: [Nb*H, W] @ [W, Wo].
        tmp = jnp.dot(mask.reshape(nb * h, w), uwt_ref[...],
                      preferred_element_type=jnp.float32)                # [Nb*H, Wo]
        # Second contraction as a single batched matmul over the block.
        uh_b = jnp.broadcast_to(uh_ref[...], (nb, ho, h))
        out = jnp.einsum('boh,bhp->bop', uh_b, tmp.reshape(nb, h, wo),
                         preferred_element_type=jnp.float32)             # [Nb, Ho, Wo]

        # TODO(synk): for W < 32 inputs (Wo < 128) these stores are lane-masked; callers with
        # W >= 32 get fully lane-dense output stores for free.
        o_ref[...] = out.astype(o_ref.dtype)


def channel_attention_forward(x, *, out_dtype=jnp.float32):
    """x: [N, C, H, W] (NCHW, PyTorch layout) -> [1, N, 4H, 4W] in `out_dtype`."""
    n, c, h, w = x.shape
    ho, wo = 4 * h, 4 * w
    uh = jnp.asarray(_bilinear_matrix(h, ho))            # [Ho, H]
    uwt = jnp.asarray(_bilinear_matrix(w, wo).T)         # [W, Wo]

    nb, ct = _pick_block_sizes(
        n, c, h, w,
        in_bytes=jnp.dtype(x.dtype).itemsize,
        out_bytes=jnp.dtype(out_dtype).itemsize)
    grid = (n // nb, c // ct)

    out = pl.pallas_call(
        _channel_attention_kernel,
        out_shape=jax.ShapeDtypeStruct((n, ho, wo), out_dtype),
        grid_spec=pltpu.PrefetchScalarGridSpec(
            num_scalar_prefetch=0,
            grid=grid,
            in_specs=[
                pl.BlockSpec((nb, ct, h, w), lambda i, k: (i, k, 0, 0)),
                pl.BlockSpec((ho, h), lambda i, k: (0, 0)),   # constant block -> DMA'd once
                pl.BlockSpec((w, wo), lambda i, k: (0, 0)),   # constant block -> DMA'd once
            ],
            out_specs=pl.BlockSpec((nb, ho, wo), lambda i, k: (i, 0, 0)),
            scratch_shapes=[pltpu.VMEM((nb, h, w), jnp.float32)],
        ),
        compiler_params=pltpu.CompilerParams(
            dimension_semantics=("parallel", "arbitrary")),
    )(x, uh, uwt)

    # torch: .repeat(1,1,1,1) on a 3-D [N,H,W] tensor prepends a singleton dim -> [1,N,H,W];
    # Upsample then treats N as channels, so per-map upsampling is identical -> [1, N, 4H, 4W].
    return out[None, ...]


def _reference_forward(x):
    """Plain-JAX reference with identical math (in-script sanity check)."""
    n, c, h, w = x.shape
    mask = jax.nn.sigmoid(jnp.sum(jnp.abs(x.astype(jnp.float32)), axis=1))   # [N, H, W]
    uh = jnp.asarray(_bilinear_matrix(h, 4 * h))                             # [Ho, H]
    uw = jnp.asarray(_bilinear_matrix(w, 4 * w))                             # [Wo, W]
    out = jnp.einsum('oh,nhw,pw->nop', uh, mask, uw)
    return out[None, ...]


if __name__ == "__main__":
    key = jax.random.PRNGKey(0)
    batch, channels, side = 2, 4, 16
    x = jax.random.normal(key, (batch, channels, side, side), jnp.float32)

    fwd = jax.jit(channel_attention_forward)
    out = fwd(x)
    out = jax.block_until_ready(out)

    assert out.shape == (1, batch, 4 * side, 4 * side), out.shape
    assert out.dtype == jnp.float32

    ref = _reference_forward(x)
    assert jnp.allclose(out, ref, atol=1e-5, rtol=1e-5), \
        float(jnp.max(jnp.abs(out - ref)))

    print("KERNEL_OK")
</pallas_src>

<mosaic_0001>
module attributes {stable_mosaic.version = 11 : i64} {
  func.func @_channel_attention_kernel(%arg0: i32, %arg1: i32, %arg2: memref<1x4x16x16xf32, #tpu.memory_space<vmem>>, %arg3: memref<64x16xf32, #tpu.memory_space<vmem>>, %arg4: memref<16x64xf32, #tpu.memory_space<vmem>>, %arg5: memref<1x64x64xf32, #tpu.memory_space<vmem>>, %arg6: memref<1x16x16xf32, #tpu.memory_space<vmem>>) attributes {dimension_semantics = [#tpu.dimension_semantics<parallel>, #tpu.dimension_semantics<arbitrary>], iteration_bounds = array<i64: 2, 1>, scalar_prefetch = 0 : i64, scratch_operands = 1 : i64, tpu.core_type = #tpu.core_type<tc>, window_params = [{transform_indices = @transform_0, window_bounds = array<i64: 1, 4, 16, 16>}, {pipeline_mode = #tpu.pipeline_mode<synchronous>, transform_indices = @transform_1, window_bounds = array<i64: 64, 16>}, {pipeline_mode = #tpu.pipeline_mode<synchronous>, transform_indices = @transform_2, window_bounds = array<i64: 16, 64>}, {transform_indices = @transform_3, window_bounds = array<i64: 1, 64, 64>}]} {
    %c0_i32 = arith.constant 0 : i32
    %0 = arith.cmpi eq, %arg1, %c0_i32 : i32
    %1 = arith.extui %0 : i1 to i32
    %c0_i32_0 = arith.constant 0 : i32
    %2 = arith.cmpi ne, %1, %c0_i32_0 : i32
    scf.if %2 {
      %cst_12 = arith.constant 0.000000e+00 : f32
      %12 = vector.broadcast %cst_12 : f32 to vector<1x16x16xf32>
      %c0_13 = arith.constant 0 : index
      %c0_14 = arith.constant 0 : index
      %c0_15 = arith.constant 0 : index
      %13 = vector.load %arg6[%c0_13, %c0_14, %c0_15] : memref<1x16x16xf32, #tpu.memory_space<vmem>>, vector<1x16x16xf32>
      tpu.vector_store %arg6[%c0_13, %c0_14, %c0_15], %12 {strides = array<i32>} : memref<1x16x16xf32, #tpu.memory_space<vmem>>, vector<1x16x16xf32>,
    } else {
    }
    %c0 = arith.constant 0 : index
    %c0_1 = arith.constant 0 : index
    %c0_2 = arith.constant 0 : index
    %c0_3 = arith.constant 0 : index
    %3 = vector.load %arg2[%c0, %c0_1, %c0_2, %c0_3] : memref<1x4x16x16xf32, #tpu.memory_space<vmem>>, vector<1x4x16x16xf32>
    %c0_4 = arith.constant 0 : index
    %c0_5 = arith.constant 0 : index
    %c0_6 = arith.constant 0 : index
    %4 = vector.load %arg6[%c0_4, %c0_5, %c0_6] : memref<1x16x16xf32, #tpu.memory_space<vmem>>, vector<1x16x16xf32>
    %5 = math.absf %3 : vector<1x4x16x16xf32>
    %cst = arith.constant dense<0.000000e+00> : vector<1x16x16xf32>
    %6 = vector.multi_reduction <add>, %5, %cst [1] : vector<1x4x16x16xf32> to vector<1x16x16xf32>
    %7 = arith.addf %4, %6 : vector<1x16x16xf32>
    %c0_7 = arith.constant 0 : index
    %c0_8 = arith.constant 0 : index
    %c0_9 = arith.constant 0 : index
    %8 = vector.load %arg6[%c0_7, %c0_8, %c0_9] : memref<1x16x16xf32, #tpu.memory_space<vmem>>, vector<1x16x16xf32>
    tpu.vector_store %arg6[%c0_7, %c0_8, %c0_9], %7 {strides = array<i32>} : memref<1x16x16xf32, #tpu.memory_space<vmem>>, vector<1x16x16xf32>,
    %c0_i32_10 = arith.constant 0 : i32
    %9 = arith.cmpi eq, %arg1, %c0_i32_10 : i32
    %10 = arith.extui %9 : i1 to i32
    %c0_i32_11 = arith.constant 0 : i32
    %11 = arith.cmpi ne, %10, %c0_i32_11 : i32
    scf.if %11 {
      %c0_12 = arith.constant 0 : index
      %c0_13 = arith.constant 0 : index
      %c0_14 = arith.constant 0 : index
      %12 = vector.load %arg6[%c0_12, %c0_13, %c0_14] : memref<1x16x16xf32, #tpu.memory_space<vmem>>, vector<1x16x16xf32>
      %cst_15 = arith.constant 0.000000e+00 : f32
      %13 = vector.broadcast %cst_15 : f32 to vector<1x16x16xf32>
      %14 = arith.subf %13, %12 : vector<1x16x16xf32>
      %15 = math.exp %14 : vector<1x16x16xf32>
      %cst_16 = arith.constant 1.000000e+00 : f32
      %16 = vector.broadcast %cst_16 : f32 to vector<1x16x16xf32>
      %17 = arith.addf %16, %15 : vector<1x16x16xf32>
      %18 = tpu.reciprocal %17 : vector<1x16x16xf32> -> vector<1x16x16xf32>
      %19 = vector.shape_cast %18 : vector<1x16x16xf32> to vector<16x16xf32>
      %c0_17 = arith.constant 0 : index
      %c0_18 = arith.constant 0 : index
      %20 = vector.load %arg4[%c0_17, %c0_18] : memref<16x64xf32, #tpu.memory_space<vmem>>, vector<16x64xf32>
      %cst_19 = arith.constant dense<0.000000e+00> : vector<16x64xf32>
      %21 = tpu.matmul %19, %20, %cst_19 {dimension_numbers = #tpu.dot_dimension_numbers<[1], [0], [0], [1], [0, 0, 1, 1], [], []>} : vector<16x16xf32>, vector<16x64xf32>, vector<16x64xf32> -> vector<16x64xf32>
      %c0_20 = arith.constant 0 : index
      %c0_21 = arith.constant 0 : index
      %22 = vector.load %arg3[%c0_20, %c0_21] : memref<64x16xf32, #tpu.memory_space<vmem>>, vector<64x16xf32>
      %23 = vector.shape_cast %22 : vector<64x16xf32> to vector<1x64x16xf32>
      %24 = vector.shape_cast %21 : vector<16x64xf32> to vector<1x16x64xf32>
      "tpu.trace_start"() <{level = 10 : i32, message = "boh,bhp->bop"}> : () -> ()
      %cst_22 = arith.constant dense<0.000000e+00> : vector<1x64x64xf32>
      %25 = tpu.matmul %23, %24, %cst_22 {dimension_numbers = #tpu.dot_dimension_numbers<[2], [1], [1], [2], [0, 0, 0, 1, 1, 2], [0], [0]>} : vector<1x64x16xf32>, vector<1x16x64xf32>, vector<1x64x64xf32> -> vector<1x64x64xf32>
      "tpu.trace_stop"() : () -> ()
      %c0_23 = arith.constant 0 : index
      %c0_24 = arith.constant 0 : index
      %c0_25 = arith.constant 0 : index
      %26 = vector.load %arg5[%c0_23, %c0_24, %c0_25] : memref<1x64x64xf32, #tpu.memory_space<vmem>>, vector<1x64x64xf32>
      tpu.vector_store %arg5[%c0_23, %c0_24, %c0_25], %25 {strides = array<i32>} : memref<1x64x64xf32, #tpu.memory_space<vmem>>, vector<1x64x64xf32>,
    } else {
    }
    return
  }
  func.func @transform_0(%arg0: i32, %arg1: i32) -> (i32, i32, i32, i32) {
    %c0_i32 = arith.constant 0 : i32
    %c0_i32_0 = arith.constant 0 : i32
    %c0_i32_1 = arith.constant 0 : i32
    return %arg0, %arg1, %c0_i32, %c0_i32_0 : i32, i32, i32, i32
  }
  func.func @transform_1(%arg0: i32, %arg1: i32) -> (i32, i32) {
    %c0_i32 = arith.constant 0 : i32
    %c0_i32_0 = arith.constant 0 : i32
    %c0_i32_1 = arith.constant 0 : i32
    return %c0_i32, %c0_i32_0 : i32, i32
  }
  func.func @transform_2(%arg0: i32, %arg1: i32) -> (i32, i32) {
    %c0_i32 = arith.constant 0 : i32
    %c0_i32_0 = arith.constant 0 : i32
    %c0_i32_1 = arith.constant 0 : i32
    return %c0_i32, %c0_i32_0 : i32, i32
  }
  func.func @transform_3(%arg0: i32, %arg1: i32) -> (i32, i32, i32) {
    %c0_i32 = arith.constant 0 : i32
    %c0_i32_0 = arith.constant 0 : i32
    %c0_i32_1 = arith.constant 0 : i32
    return %arg0, %c0_i32, %c0_i32_0 : i32, i32, i32
  }
}

</mosaic_0001>

<bundles_post_ra>
// kernel: channel_attention_forward.1
= control target key start
LH: loop header
LB: loop body
LE: loop exit
PB: predicated region body
PF: predicated region fallthrough
CT: control target
= control target key end

     0   :  { %8 = vsyncpa [#allocation4], 0  ;;  %s1084_s0 = inlined_call_operand.hbm [shape: f32[2,4,16,16], index: 0, kind: input, shape index: {}]   ;;  %s1085_s1 = inlined_call_operand.hbm [shape: f32[64,16], index: 1, kind: input, shape index: {}]   ;;  %s1086_s2 = inlined_call_operand.hbm [shape: f32[16,64], index: 2, kind: input, shape index: {}]   ;;  %s1087_s3 = inlined_call_operand.hbm [shape: f32[2,64,64], index: 3, kind: output, shape index: {}]  }
   0x1   :  { %10 = vsyncpa [#allocation4 + $0x1], 0 }
   0x2   :  { %11 = vsyncpa [#allocation7], 0 }
   0x3   :  { %12 = vsyncpa [#allocation5], 0 }
   0x4   :  { %14 = vsyncpa [#allocation5 + $0x1], 0  ;;  %s895_s12 = smov 0   ;;  %s897_s13 = smov 0  }
   0x5   :  { %s899_s14 = smov 0   ;;  %s901_s15 = smov 0  }
   0x6   :  { %s903_s16 = smov 0   ;;  %s905_s17 = smov 0  }
   0x7 LB: > { %s559_s18 = sadd.s32 4294967295, %s866_s17   ;;  %s560_s19 = sadd.s32 4294967294, %s866_s17   ;;  %s866_s17 = sphi %s905_s17, %s20_s17   ;;  %s862_s16 = sphi %s903_s16, %s1097_s16   ;;  %s858_s15 = sphi %s901_s15, %s1096_s15   ;;  %s854_s14 = sphi %s899_s14, %s1095_s14   ;;  %s850_s13 = sphi %s897_s13, %s1094_s13   ;;  %s846_s12 = sphi %s895_s12, %s1093_s12  }
   0x8   : > { %p54_p0 = scmp.ne.s32.totalorder %s850_s13, %s846_s12  ;;  %p931_p1 = scmp.eq.s32.totalorder %s559_s18, 0 }
   0x9   : > { %p126_p2 = scmp.eq.s32.totalorder %s560_s19, 1  ;;  %p561_p4 = scmp.ge.s32.totalorder %s866_s17, 1 }
   0xa   : > { %p937_p3 = por %p931_p1, %p54_p0  ;;  %p133_p6 = scmp.lt.s32.totalorder %s866_s17, 3 }
   0xb   : > { %p942_p5 = por %p126_p2, %p54_p0  ;;  %s144_s25 = sshll.u32 %s1085_s1, 4  ;;  %s145_s25 = int_to_ptr.hbm [resolvable:$true] %s144_s25 }
   0xc   : > { %p950_p7 = pnand %p561_p4, %p133_p6  ;;  %s868_s27 = smov [#allocation6]  }
   0xd   : > { %s146_s28 = sshll.u32 %s868_s27, 4  ;;  %p564_p10 = scmp.ge.s32.totalorder %s866_s17, 2  ;;  %s147_s28 = int_to_ptr.vmem [resolvable:$true] %s146_s28 }
   0xe   : > { %p606_p8 = pneg %p950_p7  ;;  %s158_s4 = sshll.u32 %s1086_s2, 4  ;;  %s159_s4 = int_to_ptr.hbm [resolvable:$true] %s158_s4 }
   0xf   : > { %s869_s5 = smov 128   ;;  %s870_s6 = smov 8  }
  0x10   : > { %p607_p9 = pnand %p606_p8, %p931_p1  ;;  %s871_s7 = smov [#allocation8]  }
  0x11   : > { %s160_s8 = sshll.u32 %s871_s7, 4  ;;  %p120_p11 = scmp.eq.s32.totalorder %s559_s18, 1  ;;  %s161_s8 = int_to_ptr.vmem [resolvable:$true] %s160_s8 }
  0x12   : > { %609 = dma.hbm_to_vmem [thread:$0]  (!%p607_p9), %s145_s25, 1024, %s147_s28, [#allocation7], %s869_s5, %s869_s5, %s870_s6  }
  0x13   : > { %612 = dma.hbm_to_vmem [thread:$0]  (!%p607_p9), %s159_s4, 256, %s161_s8, [#allocation7], %s869_s5, %s869_s5, %s870_s6  }
  0x14   : > { %s32_s9 = sadd.s32 1, %s862_s16  ;;  %s41_s10 = sadd.s32 1, %s854_s14 }
  0x15   : > { %p34_p12 = scmp.ge.s32.totalorder %s32_s9, 2  ;;  %p48_p13 = scmp.ne.s32.totalorder %s854_s14, %s850_s13 }
  0x16   : > { %p49_p0 = scmp.eq.s32.totalorder %s866_s17, 0  ;;  %p623_p4 = scmp.lt.s32.totalorder %s866_s17, 2 }
  0x17   : > { %s1099_s9 = smov (%p34_p12, %s32_s9), 0  ;;  %p977_p2 = por %p120_p11, %p48_p13 }
  0x18   : > { %s36_s19 = ssub.s32 %s862_s16, %s1099_s9  ;;  %s174_s23 = sand.u32 1, %s854_s14  }
  0x19   : > { %p39_p6 = scmp.eq.s32.totalorder %s36_s19, 0  ;;  %p50_p8 = por %p49_p0, %p48_p13 }
  0x1a   : > { %s565_s24 = sshll.u32 %s174_s23, 6  ;;  %s588_s18 = sshll.u32 %s862_s16, 6 }
  0x1b   : > { %s987_s25 = scalar_select %p39_p6, %s854_s14, %s41_s10  }
  0x1c   : > { %s186_s29 = scalar_lea.hbm %s1084_s0, %s588_s18  ;;  %s178_s4 = scalar_lea.vmem [#allocation3], %s565_s24 }
  0x1d   : > { %s187_s30 = sshll.u32 %s186_s29, 4  ;;  %s189_s7 = sshll.u32 %s178_s4, 4  ;;  %s188_s30 = int_to_ptr.hbm [resolvable:$true] %s187_s30  ;;  %s190_s7 = int_to_ptr.vmem [resolvable:$true] %s189_s7 }
  0x1e   : > { %p614_p9 = pnand %p623_p4, %p50_p8  ;;  %s175_s8 = scalar_lea.sflag [#allocation4], %s174_s23 }
  0x1f   : > { %201 = sbr.rel (%p950_p7) target bundleno = 380 (0x17c), region = 32  ;;  %s1000_s10 = sand.u32 (!%p950_p7), 1, %s850_s13  }
  0x20   : > { %616 = dma.hbm_to_vmem [thread:$0]  (!%p614_p9), %s188_s30, 1024, %s190_s7, %s175_s8, %s869_s5, %s869_s5, %s870_s6  }
  0x21   : > { %s569_s19 = sshll.u32 (!%p950_p7), %s1000_s10, 6  ;;  %s204_s24 = scalar_lea.sflag (!%p950_p7), [#allocation4], %s1000_s10 }
  0x22   : > { %s207_s18 = scalar_lea.vmem (!%p950_p7), [#allocation3], %s569_s19 }
  0x24   : > { %833 = dma.done.wait (%p937_p3), %s204_s24, 1024  }
  0x25   : > { %835 = vsyncadd (%p937_p3), %s204_s24, 4294966272 }
  0x26   : > { %837 = dma.done.wait (%p931_p1), [#allocation7], 1280  }
  0x27   : > { %839 = vsyncadd (%p931_p1), [#allocation7], 4294966016  ;;  %vm246_vm0 = vcmask 130048   ;;  %v872_v0 = vmov 0.0   ;;  %v328_v1 = vld [vmem:[#allocation8 + $0x8] sm:$0xff]  ;;  %v327_v2 = vld [vmem:[#allocation8] sm:$0xff] }
  0x28   : > { %247 = vst.msk [vmem:[#allocation2] sm:$0xff] %vm246_vm0, %v872_v0  ;;  %v249_v3 = vld [vmem:[%s207_s18] sm:$0xff]  ;;  %349 = vmatpush.msra.mxu0 %v328_v1  ;;  %v251_v4 = vld [vmem:[%s207_s18 + $0x10] sm:$0xff]  ;;  %v250_v10 = vld [vmem:[%s207_s18 + $0x8] sm:$0xff]  ;;  %vm431_vm9 = vcmask 523264   ;;  %s240_s20 = scalar_lea.vmem [#allocation9], %s569_s19 }
  0x29   : > { %248 = vst.msk [vmem:[#allocation2 + $0x8] sm:$0xff] %vm246_vm0, %v872_v0  ;;  %v253_v5 = vld [vmem:[%s207_s18 + $0x20] sm:$0xff]  ;;  %v255_v6 = vld [vmem:[%s207_s18 + $0x30] sm:$0xff]  ;;  %v259_v7 = vand.u32 2147483647, %v249_v3  ;;  %v252_v13 = vld [vmem:[%s207_s18 + $0x18] sm:$0xff] }
  0x2a   : > { %v261_v8 = vand.u32 2147483647, %v251_v4  ;;  %v263_v9 = vand.u32 2147483647, %v253_v5  ;;  %350 = vmatpush.msra.mxu0 %v327_v2  ;;  %v265_v11 = vand.u32 2147483647, %v255_v6 }
  0x2b   : > { %v268_v12 = vsel %vm246_vm0, %v259_v7, 0.0  ;;  %v254_v14 = vld [vmem:[%s207_s18 + $0x28] sm:$0xff]  ;;  %v256_v15 = vld [vmem:[%s207_s18 + $0x38] sm:$0xff]  ;;  %v260_v18 = vand.u32 2147483647, %v250_v10  ;;  %v358_v6 = vld [vmem:[#allocation6] sm:$0xff] }
  0x2c   : > { %v269_v16 = vsel %vm246_vm0, %v261_v8, 0.0  ;;  %v271_v17 = vsel %vm246_vm0, %v263_v9, 0.0  ;;  %v262_v20 = vand.u32 2147483647, %v252_v13  ;;  %v264_v21 = vand.u32 2147483647, %v254_v14 }
  0x2d   : > { %v270_v19 = vadd.f32 %v269_v16, %v268_v12  ;;  %v273_v22 = vsel %vm246_vm0, %v265_v11, 0.0  ;;  %v266_v23 = vand.u32 2147483647, %v256_v15  ;;  %v275_v24 = vsel %vm246_vm0, %v260_v18, 0.0  ;;  %v361_v5 = vld [vmem:[#allocation6 + $0x18] sm:$0xff]  ;;  %v364_v7 = vld [vmem:[#allocation6 + $0x30] sm:$0xff] }
  0x2e   : > { %v276_v26 = vsel %vm246_vm0, %v262_v20, 0.0  ;;  %v278_v27 = vsel %vm246_vm0, %v264_v21, 0.0  ;;  %v362_v8 = vld [vmem:[#allocation6 + $0x20] sm:$0xff]  ;;  %v359_v9 = vld [vmem:[#allocation6 + $0x8] sm:$0xff]  ;;  %v365_v10 = vld [vmem:[#allocation6 + $0x38] sm:$0xff]  ;;  %s589_s21 = sshll.u32 %s858_s15, 6 }
  0x2f   : > { %v272_v25 = vadd.f32 %v271_v17, %v270_v19  ;;  %v257_v28 = vld [vmem:[#allocation2] sm:$0xff]  ;;  %v277_v29 = vadd.f32 %v276_v26, %v275_v24  ;;  %v280_v31 = vsel %vm246_vm0, %v266_v23, 0.0  ;;  %v363_v11 = vld [vmem:[#allocation6 + $0x28] sm:$0xff]  ;;  %s452_s6 = scalar_lea.hbm %s1087_s3, %s589_s21  ;;  %s453_s23 = sshll.u32 %s240_s20, 4  ;;  %s454_s23 = int_to_ptr.vmem [resolvable:$true] %s453_s23 }
  0x30   : > { %v258_v34 = vld [vmem:[#allocation2 + $0x8] sm:$0xff]  ;;  %v360_v12 = vld [vmem:[#allocation6 + $0x10] sm:$0xff]  ;;  %s455_s27 = sshll.u32 %s452_s6, 4  ;;  %s441_s15 = scalar_lea.sflag [#allocation5], %s1000_s10  ;;  %s456_s27 = int_to_ptr.hbm [resolvable:$true] %s455_s27 }
  0x31   : > { %v274_v30 = vadd.f32 %v273_v22, %v272_v25  ;;  %v279_v32 = vadd.f32 %v278_v27, %v277_v29  ;;  %s794_s28 = sshra.s32 %s456_s27, 4  ;;  %s800_s7 = scalar_lea.hbm %s1087_s3, 128  ;;  %s795_s28 = int_to_ptr.hbm [resolvable:$true] %s794_s28 }
  0x32   : > { %s796_s29 = scalar_lea.hbm %s795_s28, 64  ;;  %p801_p11 = scmp.lt.s32.totalorder %s795_s28, %s1087_s3 }
  0x33   : > { %v282_v33 = vadd.f32 %v274_v30, %v257_v28  ;;  %v281_v35 = vadd.f32 %v280_v31, %v279_v32  ;;  %p797_p1 = scmp.ne.s32.totalorder %s795_s28, %s796_s29  ;;  %p802_p12 = scmp.lt.s32.totalorder %s800_s7, %s796_s29 }
  0x35   : > { %284 = vst.msk [vmem:[#allocation2] sm:$0xff] %vm246_vm0, %v282_v33  ;;  %v283_v36 = vadd.f32 %v281_v35, %v258_v34  ;;  %p798_p3 = pnand %p797_p1, %p977_p2  ;;  %p803_p13 = por %p802_p12, %p801_p11 }
  0x37   : > { %285 = vst.msk [vmem:[#allocation2 + $0x8] sm:$0xff] %vm246_vm0, %v283_v36  ;;  %p799_p7 = pneg %p798_p3 }
  0x39   : > { %p804_p0 = pnand %p803_p13, %p799_p7 }
  0x3c   : > { %v289_v37 = vld [vmem:[#allocation2] sm:$0xff] }
  0x3d   : > { %v291_v38 = vsub.f32 0.0, %v289_v37 }
  0x3e   : > { %v290_v40 = vld [vmem:[#allocation2 + $0x8] sm:$0xff] }
  0x3f   : > { %v293_v39 = vmul.f32 1.442695, %v291_v38  ;;  %v292_v41 = vsub.f32 0.0, %v290_v40 }
  0x41   : > { %682 = vpow2.f32 %v293_v39  ;;  %v295_v42 = vmul.f32 1.442695, %v292_v41 }
  0x43   : > { %684 = vpow2.f32 %v295_v42 }
  0x47   : > { %v683_v43 = vpop.eup %682 }
  0x48   : > { %v297_v44 = vadd.f32 1.0, %v683_v43 }
  0x49   : > { %v685_v45 = vpop.eup %684 }
  0x4a   : > { %686 = vrcp.f32 %v297_v44  ;;  %v298_v46 = vadd.f32 1.0, %v685_v45  ;;  %v310_v49 = vand.u32 2147483648, %v297_v44  ;;  %vm304_vm1 = vweird.f32 %v297_v44 }
  0x4b   : > { %v308_v52 = vand.u32 2147483647, %v297_v44 }
  0x4c   : > { %688 = vrcp.f32 %v298_v46  ;;  %v311_v55 = vor.u32 1.1754944e-38, %v310_v49  ;;  %vm318_vm5 = vweird.f32 %v298_v46  ;;  %v324_v59 = vand.u32 2147483648, %v298_v46 }
  0x4d   : > { %vm309_vm4 = vcmp.eq.f32.partialorder %v308_v52, 8.507059e+37  ;;  %v322_v61 = vand.u32 2147483647, %v298_v46 }
  0x4e   : > { %v325_v0 = vor.u32 1.1754944e-38, %v324_v59 }
  0x4f   : > { %vm323_vm8 = vcmp.eq.f32.partialorder %v322_v61, 8.507059e+37 }
  0x50   : > { %v687_v47 = vpop.eup %686 }
  0x51   : > { %v300_v48 = vmul.f32 %v687_v47, %v297_v44  ;;  %vm305_vm2 = vweird.f32 %v687_v47 }
  0x52   : > { %v689_v50 = vpop.eup %688  ;;  %vm306_vm3 = vmor %vm304_vm1, %vm305_vm2 }
  0x53   : > { %v301_v51 = vsub.f32 1.0, %v300_v48  ;;  %v314_v53 = vmul.f32 %v689_v50, %v298_v46  ;;  %vm319_vm6 = vweird.f32 %v689_v50 }
  0x54   : > { %vm320_vm7 = vmor %vm318_vm5, %vm319_vm6 }
  0x55   : > { %v302_v54 = vmul.f32 %v687_v47, %v301_v51  ;;  %v315_v56 = vsub.f32 1.0, %v314_v53 }
  0x57   : > { %v303_v57 = vadd.f32 %v687_v47, %v302_v54  ;;  %v316_v58 = vmul.f32 %v689_v50, %v315_v56 }
  0x59   : > { %v307_v60 = vsel %vm306_vm3, %v687_v47, %v303_v57  ;;  %v317_v63 = vadd.f32 %v689_v50, %v316_v58 }
  0x5a   : > { %v312_v62 = vsel %vm309_vm4, %v311_v55, %v307_v60 }
  0x5b   : > { %573 = vmatmul.msk.f32.vlgmr.msra.gmra.mxu0 %vm246_vm0, %v312_v62  ;;  %v321_v1 = vsel %vm320_vm7, %v689_v50, %v317_v63 }
  0x5c   : > { %v326_v2 = vsel %vm323_vm8, %v325_v0, %v321_v1 }
  0x63   : > { %574 = vmatmul.msk.f32.gmra.mxu0 %vm246_vm0, %v326_v2 }
  0xd8   : > { %v352_v3 = vpop.f32.mrf.mxu0 }
  0xe0   : > { %v355_v4 = vpop.f32.mrf.mxu0 }
  0xe1   : > { %404 = vmatpush.msra.mxu1 %v355_v4  ;;  %590 = vmatpush.msra.mxu2 %v355_v4 }
  0xe2   : > { %591 = vmatpush.msra.mxu3 %v355_v4 }
  0xe3   : > { %405 = vmatpush.msra.mxu1 %v352_v3  ;;  %592 = vmatpush.msra.mxu2 %v352_v3 }
  0xe4   : > { %593 = vmatpush.msra.mxu3 %v352_v3  ;;  %578 = vmatmul.msk.f32.vlgmr.msra.gmra.mxu2 %vm246_vm0, %v361_v5 }
  0xe5   : > { %575 = vmatmul.msk.f32.vlgmr.msra.gmra.mxu1 %vm246_vm0, %v358_v6  ;;  %581 = vmatmul.msk.f32.vlgmr.msra.gmra.mxu3 %vm246_vm0, %v364_v7 }
  0xec   : > { %579 = vmatmul.msk.f32.gmra.mxu2 %vm246_vm0, %v362_v8 }
  0xed   : > { %576 = vmatmul.msk.f32.gmra.mxu1 %vm246_vm0, %v359_v9  ;;  %582 = vmatmul.msk.f32.gmra.mxu3 %vm246_vm0, %v365_v10 }
  0xf4   : > { %580 = vmatmul.msk.f32.gmra.mxu2 %vm246_vm0, %v363_v11 }
  0xf5   : > { %577 = vmatmul.msk.f32.gmra.mxu1 %vm246_vm0, %v360_v12 }
 0x162   : > { %v407_v13 = vpop.f32.mrf.mxu1 }
 0x163   : > { %432 = vst.msk [vmem:[%s240_s20] sm:$0xff] %vm431_vm9, %v407_v13 }
 0x167   : > { %v416_v14 = vpop.f32.mrf.mxu2 }
 0x168   : > { %435 = vst.msk [vmem:[%s240_s20 + $0x18] sm:$0xff] %vm431_vm9, %v416_v14  ;;  %v425_v15 = vpop.f32.mrf.mxu3 }
 0x169   : > { %438 = vst.msk [vmem:[%s240_s20 + $0x30] sm:$0xff] %vm431_vm9, %v425_v15 }
 0x16a   : > { %v410_v16 = vpop.f32.mrf.mxu1 }
 0x16b   : > { %433 = vst.msk [vmem:[%s240_s20 + $0x8] sm:$0xff] %vm431_vm9, %v410_v16 }
 0x16f   : > { %v419_v17 = vpop.f32.mrf.mxu2 }
 0x170   : > { %436 = vst.msk [vmem:[%s240_s20 + $0x20] sm:$0xff] %vm431_vm9, %v419_v17  ;;  %v428_v18 = vpop.f32.mrf.mxu3 }
 0x171   : > { %439 = vst.msk [vmem:[%s240_s20 + $0x38] sm:$0xff] %vm431_vm9, %v428_v18 }
 0x172   : > { %v413_v19 = vpop.f32.mrf.mxu1 }
 0x173   : > { %434 = vst.msk [vmem:[%s240_s20 + $0x10] sm:$0xff] %vm431_vm9, %v413_v19 }
 0x177   : > { %v422_v20 = vpop.f32.mrf.mxu2 }
 0x178   : > { %437 = vst.msk [vmem:[%s240_s20 + $0x28] sm:$0xff] %vm431_vm9, %v422_v20 }
 0x179   : > { %807 = shalt.err (!%p804_p0)
}
 0x17a   : > { %s873_s10 = smov 128   ;;  %s874_s24 = smov 8  }
 0x17b   : > { %604 = dma.vmem_to_hbm [thread:$0]  (%p977_p2), %s454_s23, 1024, %s456_s27, %s441_s15, %s873_s10, %s873_s10, %s874_s24  }
 0x17c PF: > { %s470_s18 = sand.u32 1, %s846_s12   ;;  %p618_p4 = pnand %p564_p10, %p942_p5 }
 0x17d   : > { %s471_s20 = scalar_lea.sflag [#allocation5], %s470_s18 }
 0x17e   : > { %p619_p6 = pneg %p618_p4 }
 0x180   : > { %841 = dma.done.wait (%p619_p6), %s471_s20, 1024  }
 0x181   : > { %843 = vsyncadd (%p619_p6), %s471_s20, 4294966272  ;;  %s20_s17 = sadd.s32 1, %s866_s17   ;;  %s1093_s12 = smov %s850_s13 }
 0x182   : > { %p17_p8 = scmp.ge.s32.totalorder %s20_s17, 4   ;;  %s1094_s13 = smov %s854_s14 }
 0x183   : > { %s1095_s14 = smov %s987_s25  ;;  %s1096_s15 = smov %s862_s16 }
 0x184   : > { %s1097_s16 = smov %s1099_s9  ;;  %19 = sbr.rel (!%p17_p8) target bundleno = 7 (0x7), region = 93 }
 0x189   :  { %477 = vsyncpa [#allocation4], 1 }
 0x18a   :  { %479 = vsyncpa [#allocation4 + $0x1], 1 }
 0x18b   :  { %480 = vsyncpa [#allocation7], 1 }
 0x18c   :  { %481 = vsyncpa [#allocation5], 1 }
 0x18d   :  { %483 = vsyncpa [#allocation5 + $0x1], 1 }

</bundles_post_ra>
